<compile_context>
chip_gen: v7x
topology: tpu7x:2x2x1
jax: 0.10.0
libtpu: 0.0.40
codegen_flags: <defaults>
</compile_context>

<pallas_src>
import numpy as np
import jax
import jax.numpy as jnp
from jax import lax
from jax.experimental import pallas as pl
from jax.experimental.pallas import tpu as pltpu


def _proj_kernel(x_ref, w_ref, b_ref, o_ref):
    # x_ref: (tn, C_in), w_ref: (C_out, C_in), b_ref: (C_out, 1), o_ref: (C_out, tn)
    acc = lax.dot_general(
        w_ref[...], x_ref[...],
        dimension_numbers=(((1,), (1,)), ((), ())),   # contract on C_in
        preferred_element_type=jnp.float32)            # (C_out, tn)
    o_ref[...] = (acc + b_ref[...]).astype(o_ref.dtype)


def _pick_spatial_tile(N, tn_max):
    """Largest tile <= tn_max that divides N and satisfies the (8,128) lane rule."""
    if N <= tn_max:
        return N                        # whole row: always legal (full-dim block)
    start = (min(tn_max, N) // 128) * 128
    for t in range(start, 0, -128):     # multiple of 128 that divides N
        if N % t == 0:
            return t
    return N                            # fall back: no tiling along N


def depthwise_projection_forward(x, weight, bias, groups, tn=1024):
    """Forward pass of depthwise_projection.

    x:      (B, N, C_in), N = P**3
    weight: (C_out, C_in // groups)  -- Conv3d (1,1,1) kernel, spatial dims squeezed
    bias:   (C_out,)
    returns (B, C_out, P, P, P), matching the PyTorch module output.
    """
    B, N, C_in = x.shape
    P = int(round(np.cbrt(N)))
    assert P * P * P == N
    C_out = weight.shape[0]
    assert C_in % groups == 0 and C_out % groups == 0
    cog = C_out // groups

    # Glue: grouped conv == dense matmul with a block-diagonal weight matrix.
    w_full = jax.scipy.linalg.block_diag(
        *[weight[g * cog:(g + 1) * cog] for g in range(groups)])     # (C_out, C_in)
    w_full = w_full.astype(weight.dtype)
    b2 = bias.reshape(C_out, 1)

    tn = _pick_spatial_tile(N, tn)
    assert N % tn == 0

    # Kernel writes channels-first, spatially-flattened output directly: (B, C_out, N).
    y = pl.pallas_call(
        _proj_kernel,
        out_shape=jax.ShapeDtypeStruct((B, C_out, N), x.dtype),
        grid_spec=pltpu.PrefetchScalarGridSpec(
            num_scalar_prefetch=0,
            grid=(B, N // tn),
            in_specs=[
                # activations: (tn, C_in) tile straight from (B, N, C_in)
                pl.BlockSpec((None, tn, C_in), lambda b, j: (b, j, 0)),
                # block-diagonal weight, resident
                pl.BlockSpec((C_out, C_in), lambda b, j: (0, 0)),
                # bias, resident
                pl.BlockSpec((C_out, 1), lambda b, j: (0, 0)),
            ],
            # lane-dense transposed output tile (C_out, tn)
            out_specs=pl.BlockSpec((None, C_out, tn), lambda b, j: (b, 0, j)),
        ),
        compiler_params=pltpu.CompilerParams(
            dimension_semantics=("parallel", "parallel")),
    )(x, w_full, b2)

    # Free reshape (contiguous) -> PyTorch NCDHW output of the 1x1x1 conv.
    return y.reshape(B, C_out, P, P, P)


def _reference_forward(x, weight, bias, groups):
    """Pure-JAX reference of the grouped 1x1x1 conv (for verification)."""
    B, N, C_in = x.shape
    P = int(round(np.cbrt(N)))
    C_out = weight.shape[0]
    cig, cog = C_in // groups, C_out // groups
    outs = []
    for g in range(groups):
        xg = x[..., g * cig:(g + 1) * cig]               # (B, N, cig)
        wg = weight[g * cog:(g + 1) * cog]               # (cog, cig)
        outs.append(jnp.einsum('bnc,oc->bno', xg, wg))
    y = jnp.concatenate(outs, axis=-1) + bias[None, None, :]
    return y.reshape(B, P, P, P, C_out).transpose(0, 4, 1, 2, 3)


if __name__ == "__main__":
    # Small, forward-consistent shapes.
    B, P = 2, 8
    N = P * P * P            # 512  (so cbrt(N) == P)
    in_features, out_features, groups = 32, 16, 4

    key = jax.random.PRNGKey(0)
    kx, kw, kb = jax.random.split(key, 3)

    x = jax.random.normal(kx, (B, N, in_features), dtype=jnp.float32)
    # Conv3d weight: (out_features, in_features // groups, 1, 1, 1) -> squeeze spatial dims.
    weight = (jax.random.normal(kw, (out_features, in_features // groups),
                                dtype=jnp.float32) * 0.1)
    bias = jax.random.normal(kb, (out_features,), dtype=jnp.float32) * 0.1

    y = depthwise_projection_forward(x, weight, bias, groups)
    y = jax.block_until_ready(y)

    y_ref = _reference_forward(x, weight, bias, groups)
    assert y.shape == (B, out_features, P, P, P), y.shape
    np.testing.assert_allclose(np.asarray(y), np.asarray(y_ref), rtol=1e-5, atol=1e-5)

    print("KERNEL_OK")
</pallas_src>

<mosaic_0001>
module attributes {stable_mosaic.version = 11 : i64} {
  func.func @_proj_kernel(%arg0: i32, %arg1: i32, %arg2: memref<1x512x32xf32, #tpu.memory_space<vmem>>, %arg3: memref<16x32xf32, #tpu.memory_space<vmem>>, %arg4: memref<16x1xf32, #tpu.memory_space<vmem>>, %arg5: memref<1x16x512xf32, #tpu.memory_space<vmem>>) attributes {dimension_semantics = [#tpu.dimension_semantics<parallel>, #tpu.dimension_semantics<parallel>], iteration_bounds = array<i64: 2, 1>, scalar_prefetch = 0 : i64, scratch_operands = 0 : i64, tpu.core_type = #tpu.core_type<tc>, window_params = [{transform_indices = @transform_0, window_bounds = array<i64: 1, 512, 32>}, {pipeline_mode = #tpu.pipeline_mode<synchronous>, transform_indices = @transform_1, window_bounds = array<i64: 16, 32>}, {pipeline_mode = #tpu.pipeline_mode<synchronous>, transform_indices = @transform_2, window_bounds = array<i64: 16, 1>}, {transform_indices = @transform_3, window_bounds = array<i64: 1, 16, 512>}]} {
    %c0 = arith.constant 0 : index
    %c0_0 = arith.constant 0 : index
    %0 = vector.load %arg3[%c0, %c0_0] : memref<16x32xf32, #tpu.memory_space<vmem>>, vector<16x32xf32>
    %c0_1 = arith.constant 0 : index
    %c0_2 = arith.constant 0 : index
    %c0_3 = arith.constant 0 : index
    %1 = vector.load %arg2[%c0_1, %c0_2, %c0_3] : memref<1x512x32xf32, #tpu.memory_space<vmem>>, vector<1x512x32xf32>
    %2 = vector.shape_cast %1 : vector<1x512x32xf32> to vector<512x32xf32>
    %cst = arith.constant dense<0.000000e+00> : vector<16x512xf32>
    %3 = tpu.matmul %0, %2, %cst {dimension_numbers = #tpu.dot_dimension_numbers<[1], [1], [0], [0], [0, 0, 1, 0], [], []>} : vector<16x32xf32>, vector<512x32xf32>, vector<16x512xf32> -> vector<16x512xf32>
    %c0_4 = arith.constant 0 : index
    %c0_5 = arith.constant 0 : index
    %4 = vector.load %arg4[%c0_4, %c0_5] : memref<16x1xf32, #tpu.memory_space<vmem>>, vector<16x1xf32>
    %5 = vector.broadcast %4 : vector<16x1xf32> to vector<16x512xf32>
    %6 = arith.addf %3, %5 : vector<16x512xf32>
    %c0_6 = arith.constant 0 : index
    %c0_7 = arith.constant 0 : index
    %c0_8 = arith.constant 0 : index
    %7 = vector.load %arg5[%c0_6, %c0_7, %c0_8] : memref<1x16x512xf32, #tpu.memory_space<vmem>>, vector<1x16x512xf32>
    %8 = vector.shape_cast %7 : vector<1x16x512xf32> to vector<16x512xf32>
    %9 = vector.shape_cast %6 : vector<16x512xf32> to vector<1x16x512xf32>
    tpu.vector_store %arg5[%c0_6, %c0_7, %c0_8], %9 {strides = array<i32>} : memref<1x16x512xf32, #tpu.memory_space<vmem>>, vector<1x16x512xf32>,
    return
  }
  func.func @transform_0(%arg0: i32, %arg1: i32) -> (i32, i32, i32) {
    %c0_i32 = arith.constant 0 : i32
    %c0_i32_0 = arith.constant 0 : i32
    return %arg0, %arg1, %c0_i32 : i32, i32, i32
  }
  func.func @transform_1(%arg0: i32, %arg1: i32) -> (i32, i32) {
    %c0_i32 = arith.constant 0 : i32
    %c0_i32_0 = arith.constant 0 : i32
    %c0_i32_1 = arith.constant 0 : i32
    return %c0_i32, %c0_i32_0 : i32, i32
  }
  func.func @transform_2(%arg0: i32, %arg1: i32) -> (i32, i32) {
    %c0_i32 = arith.constant 0 : i32
    %c0_i32_0 = arith.constant 0 : i32
    %c0_i32_1 = arith.constant 0 : i32
    return %c0_i32, %c0_i32_0 : i32, i32
  }
  func.func @transform_3(%arg0: i32, %arg1: i32) -> (i32, i32, i32) {
    %c0_i32 = arith.constant 0 : i32
    %c0_i32_0 = arith.constant 0 : i32
    return %arg0, %c0_i32, %arg1 : i32, i32, i32
  }
}

</mosaic_0001>

<bundles_post_ra>
// kernel: tpu_custom_call.1
= control target key start
LH: loop header
LB: loop body
LE: loop exit
PB: predicated region body
PF: predicated region fallthrough
CT: control target
= control target key end

     0   :  { %8 = vsyncpa [#allocation3], 0  ;;  %s1429_s0 = inlined_call_operand.vmem [shape: f32[2,512,32], index: 0, kind: input, shape index: {}]   ;;  %s1430_s1 = inlined_call_operand.vmem [shape: f32[16,32], index: 1, kind: input, shape index: {}]   ;;  %s1431_s2 = inlined_call_operand.vmem [shape: f32[16,1], index: 2, kind: input, shape index: {}]   ;;  %s1432_s3 = inlined_call_operand.hbm [shape: f32[2,16,512], index: 3, kind: output, shape index: {}]  }
   0x1   :  { %10 = vsyncpa [#allocation3 + $0x1], 0  ;;  %s1148_s12 = smov 0   ;;  %s1150_s13 = smov 0  }
   0x2   :  { %s1152_s14 = smov 0   ;;  %s1154_s15 = smov 0  }
   0x3   :  { %s1156_s16 = smov 0   ;;  %s1158_s17 = smov 0  }
   0x4 LB: > { %s734_s18 = sadd.s32 4294967295, %s1122_s17   ;;  %s735_s19 = sadd.s32 4294967294, %s1122_s17   ;;  %s1122_s17 = sphi %s1158_s17, %s16_s17   ;;  %s1118_s16 = sphi %s1156_s16, %s1441_s16   ;;  %s1114_s15 = sphi %s1154_s15, %s1440_s15   ;;  %s1110_s14 = sphi %s1152_s14, %s1439_s14   ;;  %s1106_s13 = sphi %s1150_s13, %s1438_s13   ;;  %s1102_s12 = sphi %s1148_s12, %s1437_s12  }
   0x5   : > { %s28_s20 = sadd.s32 1, %s1118_s16  ;;  %s107_s21 = sadd.s32 1, %s1110_s14 }
   0x6   : > { %p30_p0 = scmp.ge.s32.totalorder %s28_s20, 2  ;;  %p117_p1 = scmp.ne.s32.totalorder %s1110_s14, %s1106_s13 }
   0x7   : > { %p118_p2 = scmp.eq.s32.totalorder %s734_s18, 1  ;;  %p123_p3 = scmp.ne.s32.totalorder %s1106_s13, %s1102_s12 }
   0x8   : > { %s1443_s20 = smov (%p30_p0, %s28_s20), 0  ;;  %p124_p5 = scmp.eq.s32.totalorder %s735_s19, 1 }
   0x9   : > { %p1188_p4 = por %p118_p2, %p117_p1  ;;  %s102_s23 = ssub.s32 %s1118_s16, %s1443_s20 }
   0xa   : > { %p738_p6 = scmp.ge.s32.totalorder %s1122_s17, 1  ;;  %p105_p7 = scmp.eq.s32.totalorder %s102_s23, 0 }
   0xb   : > { %p1195_p8 = por %p124_p5, %p123_p3  ;;  %p161_p9 = scmp.lt.s32.totalorder %s1122_s17, 3 }
   0xc   : > { %s1201_s25 = scalar_select %p105_p7, %s1110_s14, %s107_s21  }
   0xd   : > { %p162_p10 = pnand %p738_p6, %p161_p9 }
   0xe   : > { %p190_p11 = scmp.lt.s32.totalorder (!%p162_p10), %s1114_s15, 1  ;;  %vm278_vm0 = vcmask (!%p162_p10), 261120   ;;  %v1207_v0 = vld [vmem:[%s1430_s1] sm:$0xff] (!%p162_p10)  ;;  %v1124_v2 = vmov (!%p162_p10), 0   ;;  %v267_v3 = vld [vmem:[%s1431_s2 + $0x8] sm:$0xff] (!%p162_p10)  ;;  %s186_s18 = sand.u32 (!%p162_p10), 1, %s1106_s13  }
   0xf   : > { %165 = sbr.rel (%p162_p10) target bundleno = 329 (0x149), region = 32  ;;  %v266_v1 = vld [vmem:[%s1431_s2] sm:$0xff] (!%p162_p10)  ;;  %849 = vmatprep.mubr.msk.f32.mxu0 (!%p162_p10), %vm278_vm0, %v1207_v0  ;;  %885 = vmatprep.mubr.msk.f32.mxu1 (!%p162_p10), %vm278_vm0, %v1207_v0  ;;  %vm1227_vm1 = vmpackc.low (!%p162_p10), %vm278_vm0, %vm278_vm0  ;;  %s739_s19 = sshll.u32 (!%p162_p10), %s186_s18, 6 }
  0x10   : > { %1043 = vset.pattern.permute.xlu0 (!%p162_p10), %v1124_v2  ;;  %s188_s21 = scalar_lea.vmem (!%p162_p10), [#allocation2], %s739_s19  ;;  %s816_s23 = sshll.u32 (!%p162_p10), %s1114_s15, 10 }
  0x11   : > { %270 = vperm.xlu0 (!%p162_p10), %1043, %v266_v1   ;;  %s655_s26 = sshll.u32 (!%p162_p10), %s188_s21, 4  ;;  %s1377_s29 = scalar_lea.hbm (!%p162_p10), %s1432_s3, %s816_s23  ;;  %s1379_s26 = int_to_ptr.vmem [resolvable:$true] %s655_s26 }
  0x15   : > { %275 = vperm.xlu0 (!%p162_p10), %1043, %v267_v3  }
  0x16   : > { %s191_s30 = scalar_select %p190_p11, %s1114_s15, 1 }
  0x17   : > { %s1383_s15 = scalar_lea.sflag [#allocation3], %s186_s18 }
  0x18   : > { %s815_s4 = sshll.u32 %s191_s30, 9  ;;  %s1044_s30 = scalar_lea.vmem %s1379_s26, 1024 }
  0x19   : > { %s1223_s9 = scalar_lea.vmem %s1429_s0, %s815_s4  ;;  %p1045_p12 = scmp.ne.s32.totalorder %s1379_s26, %s1044_s30 }
  0x1a   : > { %v218_v5 = vld [vmem:[%s1223_s9 + $0x80] sm:$0xff]  ;;  %v219_v6 = vld [vmem:[%s1223_s9 + $0x88] sm:$0xff]  ;;  %v220_v16 = vld [vmem:[%s1223_s9 + $0x90] sm:$0xff]  ;;  %s1125_s4 = smov [#allocation2]  }
  0x1b   : > { %v250_v7 = vld [vmem:[%s1223_s9 + $0x180] sm:$0xff]  ;;  %v889_v8 = vpack.c.bf16 %v219_v6, %v218_v5  ;;  %v251_v9 = vld [vmem:[%s1223_s9 + $0x188] sm:$0xff]  ;;  %v221_v18 = vld [vmem:[%s1223_s9 + $0x98] sm:$0xff]  ;;  %p1046_p13 = pnand %p1045_p12, %p1188_p4  ;;  %s1048_s5 = sshll.u32 %s1125_s4, 4  ;;  %s1049_s5 = int_to_ptr.vmem [resolvable:$false] %s1048_s5 }
  0x1c   : > { %v202_v10 = vld [vmem:[%s1223_s9] sm:$0xff]  ;;  %v203_v11 = vld [vmem:[%s1223_s9 + $0x8] sm:$0xff]  ;;  %v937_v12 = vpack.c.bf16 %v251_v9, %v250_v7  ;;  %v252_v19 = vld [vmem:[%s1223_s9 + $0x190] sm:$0xff]  ;;  %v895_v21 = vpack.c.bf16 %v221_v18, %v220_v16  ;;  %s1050_s6 = scalar_lea.vmem %s1049_s5, 2048  ;;  %p1051_p1 = scmp.lt.s32.totalorder %s1379_s26, %s1049_s5 }
  0x1d   : > { %v892_v13 = vpack.c.bf16 %v203_v11, %v202_v10  ;;  %v234_v14 = vld [vmem:[%s1223_s9 + $0x100] sm:$0xff]  ;;  %v235_v15 = vld [vmem:[%s1223_s9 + $0x108] sm:$0xff]  ;;  %891 = vmatprep.subr.msk.bf16.mxu0 %vm1227_vm1, %v889_v8  ;;  %v253_v20 = vld [vmem:[%s1223_s9 + $0x198] sm:$0xff]  ;;  %p1047_p0 = pneg %p1046_p13  ;;  %p1052_p2 = scmp.lt.s32.totalorder %s1050_s6, %s1044_s30 }
  0x1e   : > { %v940_v17 = vpack.c.bf16 %v235_v15, %v234_v14  ;;  %939 = vmatprep.subr.msk.bf16.mxu1 %vm1227_vm1, %v937_v12  ;;  %v943_v22 = vpack.c.bf16 %v253_v20, %v252_v19  ;;  %v204_v23 = vld [vmem:[%s1223_s9 + $0x10] sm:$0xff]  ;;  %v205_v24 = vld [vmem:[%s1223_s9 + $0x18] sm:$0xff]  ;;  %v222_v27 = vld [vmem:[%s1223_s9 + $0xa0] sm:$0xff] }
  0x1f   : > { %894 = vmatpush3.bf16.xpose.msk.msra.mxu0 %vm1227_vm1, %v892_v13  ;;  %v236_v25 = vld [vmem:[%s1223_s9 + $0x110] sm:$0xff]  ;;  %v237_v26 = vld [vmem:[%s1223_s9 + $0x118] sm:$0xff]  ;;  %v223_v28 = vld [vmem:[%s1223_s9 + $0xa8] sm:$0xff]  ;;  %v898_v31 = vpack.c.bf16 %v205_v24, %v204_v23  ;;  %p1053_p3 = por %p1052_p2, %p1051_p1 }
  0x20   : > { %942 = vmatpush3.bf16.xpose.msk.msra.mxu1 %vm1227_vm1, %v940_v17  ;;  %897 = vmatprep.subr.msk.bf16.mxu0 %vm1227_vm1, %v895_v21  ;;  %v254_v29 = vld [vmem:[%s1223_s9 + $0x1a0] sm:$0xff]  ;;  %v255_v30 = vld [vmem:[%s1223_s9 + $0x1a8] sm:$0xff]  ;;  %v946_v32 = vpack.c.bf16 %v237_v26, %v236_v25  ;;  %v901_v33 = vpack.c.bf16 %v223_v28, %v222_v27  ;;  %v224_v39 = vld [vmem:[%s1223_s9 + $0xb0] sm:$0xff] }
  0x21   : > { %945 = vmatprep.subr.msk.bf16.mxu1 %vm1227_vm1, %v943_v22  ;;  %v949_v34 = vpack.c.bf16 %v255_v30, %v254_v29  ;;  %v206_v35 = vld [vmem:[%s1223_s9 + $0x20] sm:$0xff]  ;;  %v207_v36 = vld [vmem:[%s1223_s9 + $0x28] sm:$0xff]  ;;  %v225_v40 = vld [vmem:[%s1223_s9 + $0xb8] sm:$0xff]  ;;  %p1054_p5 = pnand %p1053_p3, %p1047_p0 }
  0x22   : > { %v238_v37 = vld [vmem:[%s1223_s9 + $0x120] sm:$0xff]  ;;  %v239_v38 = vld [vmem:[%s1223_s9 + $0x128] sm:$0xff]  ;;  %v256_v41 = vld [vmem:[%s1223_s9 + $0x1b0] sm:$0xff]  ;;  %v904_v43 = vpack.c.bf16 %v207_v36, %v206_v35  ;;  %v907_v45 = vpack.c.bf16 %v225_v40, %v224_v39 }
  0x23   : > { %v257_v42 = vld [vmem:[%s1223_s9 + $0x1b8] sm:$0xff]  ;;  %v952_v44 = vpack.c.bf16 %v239_v38, %v238_v37  ;;  %v208_v47 = vld [vmem:[%s1223_s9 + $0x30] sm:$0xff]  ;;  %v226_v51 = vld [vmem:[%s1223_s9 + $0xc0] sm:$0xff] }
  0x24   : > { %v955_v46 = vpack.c.bf16 %v257_v42, %v256_v41  ;;  %v209_v48 = vld [vmem:[%s1223_s9 + $0x38] sm:$0xff]  ;;  %v240_v49 = vld [vmem:[%s1223_s9 + $0x130] sm:$0xff]  ;;  %v227_v52 = vld [vmem:[%s1223_s9 + $0xc8] sm:$0xff] }
  0x25   : > { %v241_v50 = vld [vmem:[%s1223_s9 + $0x138] sm:$0xff]  ;;  %v258_v53 = vld [vmem:[%s1223_s9 + $0x1c0] sm:$0xff]  ;;  %v259_v54 = vld [vmem:[%s1223_s9 + $0x1c8] sm:$0xff]  ;;  %v910_v55 = vpack.c.bf16 %v209_v48, %v208_v47  ;;  %v913_v57 = vpack.c.bf16 %v227_v52, %v226_v51 }
  0x26   : > { %v958_v56 = vpack.c.bf16 %v241_v50, %v240_v49  ;;  %v961_v58 = vpack.c.bf16 %v259_v54, %v258_v53  ;;  %v210_v59 = vld [vmem:[%s1223_s9 + $0x40] sm:$0xff]  ;;  %v211_v60 = vld [vmem:[%s1223_s9 + $0x48] sm:$0xff]  ;;  %v228_v63 = vld [vmem:[%s1223_s9 + $0xd0] sm:$0xff] }
  0x27   : > { %900 = vmatpush3.bf16.xpose.msk.msra.mxu0 %vm1227_vm1, %v898_v31  ;;  %v242_v61 = vld [vmem:[%s1223_s9 + $0x140] sm:$0xff]  ;;  %v243_v62 = vld [vmem:[%s1223_s9 + $0x148] sm:$0xff]  ;;  %v229_v1 = vld [vmem:[%s1223_s9 + $0xd8] sm:$0xff]  ;;  %v916_v5 = vpack.c.bf16 %v211_v60, %v210_v59 }
  0x28   : > { %948 = vmatpush3.bf16.xpose.msk.msra.mxu1 %vm1227_vm1, %v946_v32  ;;  %903 = vmatprep.subr.msk.bf16.mxu0 %vm1227_vm1, %v901_v33  ;;  %v260_v2 = vld [vmem:[%s1223_s9 + $0x1d0] sm:$0xff]  ;;  %v261_v3 = vld [vmem:[%s1223_s9 + $0x1d8] sm:$0xff]  ;;  %v964_v6 = vpack.c.bf16 %v243_v62, %v242_v61  ;;  %v919_v7 = vpack.c.bf16 %v229_v1, %v228_v63  ;;  %v230_v13 = vld [vmem:[%s1223_s9 + $0xe0] sm:$0xff] }
  0x29   : > { %951 = vmatprep.subr.msk.bf16.mxu1 %vm1227_vm1, %v949_v34  ;;  %v967_v8 = vpack.c.bf16 %v261_v3, %v260_v2  ;;  %v212_v9 = vld [vmem:[%s1223_s9 + $0x50] sm:$0xff]  ;;  %v213_v10 = vld [vmem:[%s1223_s9 + $0x58] sm:$0xff]  ;;  %v231_v14 = vld [vmem:[%s1223_s9 + $0xe8] sm:$0xff] }
  0x2a   : > { %v244_v11 = vld [vmem:[%s1223_s9 + $0x150] sm:$0xff]  ;;  %v245_v12 = vld [vmem:[%s1223_s9 + $0x158] sm:$0xff]  ;;  %v262_v15 = vld [vmem:[%s1223_s9 + $0x1e0] sm:$0xff]  ;;  %v922_v17 = vpack.c.bf16 %v213_v10, %v212_v9  ;;  %v925_v19 = vpack.c.bf16 %v231_v14, %v230_v13 }
  0x2b   : > { %v263_v16 = vld [vmem:[%s1223_s9 + $0x1e8] sm:$0xff]  ;;  %v970_v18 = vpack.c.bf16 %v245_v12, %v244_v11  ;;  %v214_v21 = vld [vmem:[%s1223_s9 + $0x60] sm:$0xff]  ;;  %v232_v25 = vld [vmem:[%s1223_s9 + $0xf0] sm:$0xff] }
  0x2c   : > { %v973_v20 = vpack.c.bf16 %v263_v16, %v262_v15  ;;  %v215_v22 = vld [vmem:[%s1223_s9 + $0x68] sm:$0xff]  ;;  %v246_v23 = vld [vmem:[%s1223_s9 + $0x160] sm:$0xff]  ;;  %v233_v26 = vld [vmem:[%s1223_s9 + $0xf8] sm:$0xff] }
  0x2d   : > { %v247_v24 = vld [vmem:[%s1223_s9 + $0x168] sm:$0xff]  ;;  %v264_v27 = vld [vmem:[%s1223_s9 + $0x1f0] sm:$0xff]  ;;  %v265_v28 = vld [vmem:[%s1223_s9 + $0x1f8] sm:$0xff]  ;;  %v928_v29 = vpack.c.bf16 %v215_v22, %v214_v21  ;;  %v931_v31 = vpack.c.bf16 %v233_v26, %v232_v25 }
  0x2e   : > { %v976_v30 = vpack.c.bf16 %v247_v24, %v246_v23  ;;  %v979_v32 = vpack.c.bf16 %v265_v28, %v264_v27  ;;  %v216_v33 = vld [vmem:[%s1223_s9 + $0x70] sm:$0xff]  ;;  %v217_v34 = vld [vmem:[%s1223_s9 + $0x78] sm:$0xff]  ;;  %v201_v39 = vld [vmem:[%s1430_s1 + $0x8] sm:$0xff] }
  0x2f   : > { %906 = vmatpush3.bf16.xpose.msk.msra.mxu0 %vm1227_vm1, %v904_v43  ;;  %v248_v35 = vld [vmem:[%s1223_s9 + $0x170] sm:$0xff]  ;;  %v249_v36 = vld [vmem:[%s1223_s9 + $0x178] sm:$0xff]  ;;  %v934_v37 = vpack.c.bf16 %v217_v34, %v216_v33 }
  0x30   : > { %954 = vmatpush3.bf16.xpose.msk.msra.mxu1 %vm1227_vm1, %v952_v44  ;;  %909 = vmatprep.subr.msk.bf16.mxu0 %vm1227_vm1, %v907_v45  ;;  %v982_v38 = vpack.c.bf16 %v249_v36, %v248_v35 }
  0x31   : > { %957 = vmatprep.subr.msk.bf16.mxu1 %vm1227_vm1, %v955_v46 }
  0x37   : > { %912 = vmatpush3.bf16.xpose.msk.msra.mxu0 %vm1227_vm1, %v910_v55 }
  0x38   : > { %960 = vmatpush3.bf16.xpose.msk.msra.mxu1 %vm1227_vm1, %v958_v56  ;;  %915 = vmatprep.subr.msk.bf16.mxu0 %vm1227_vm1, %v913_v57 }
  0x39   : > { %963 = vmatprep.subr.msk.bf16.mxu1 %vm1227_vm1, %v961_v58 }
  0x3f   : > { %918 = vmatpush3.bf16.xpose.msk.msra.mxu0 %vm1227_vm1, %v916_v5 }
  0x40   : > { %966 = vmatpush3.bf16.xpose.msk.msra.mxu1 %vm1227_vm1, %v964_v6  ;;  %921 = vmatprep.subr.msk.bf16.mxu0 %vm1227_vm1, %v919_v7 }
  0x41   : > { %969 = vmatprep.subr.msk.bf16.mxu1 %vm1227_vm1, %v967_v8 }
  0x47   : > { %924 = vmatpush3.bf16.xpose.msk.msra.mxu0 %vm1227_vm1, %v922_v17 }
  0x48   : > { %972 = vmatpush3.bf16.xpose.msk.msra.mxu1 %vm1227_vm1, %v970_v18  ;;  %927 = vmatprep.subr.msk.bf16.mxu0 %vm1227_vm1, %v925_v19 }
  0x49   : > { %975 = vmatprep.subr.msk.bf16.mxu1 %vm1227_vm1, %v973_v20 }
  0x4f   : > { %930 = vmatpush3.bf16.xpose.msk.msra.mxu0 %vm1227_vm1, %v928_v29 }
  0x50   : > { %978 = vmatpush3.bf16.xpose.msk.msra.mxu1 %vm1227_vm1, %v976_v30  ;;  %933 = vmatprep.subr.msk.bf16.mxu0 %vm1227_vm1, %v931_v31 }
  0x51   : > { %981 = vmatprep.subr.msk.bf16.mxu1 %vm1227_vm1, %v979_v32 }
  0x57   : > { %936 = vmatpush3.bf16.xpose.msk.msra.mxu0 %vm1227_vm1, %v934_v37 }
  0x58   : > { %984 = vmatpush3.bf16.xpose.msk.msra.mxu1 %vm1227_vm1, %v982_v38 }
  0x5e   : > { %850 = vmatmul.mubr.msk.f32.vlgmr.msra.gmra.mrb[0].mxu0 %vm278_vm0, %v1207_v0 }
  0x5f   : > { %886 = vmatmul.mubr.msk.f32.vlgmr.msra.gmra.mrb[0].mxu1 %vm278_vm0, %v1207_v0  ;;  %851 = vmatprep.mubr.msk.f32.mxu0 %vm278_vm0, %v201_v39 }
  0x60   : > { %887 = vmatprep.mubr.msk.f32.mxu1 %vm278_vm0, %v201_v39 }
  0x62   : > { %852 = vmatmul.mubr.msk.f32.gmra.mrb[2].mxu0 %vm278_vm0, %v201_v39 }
  0x63   : > { %888 = vmatmul.mubr.msk.f32.gmra.mrb[2].mxu1 %vm278_vm0, %v201_v39 }
  0x90   : > { %v271_v4 = vpop.permute.xlu0 %270 }
  0x94   : > { %v276_v47 = vpop.permute.xlu0 %275 }
 0x131   : > { %v543_v40 = vpop.f32.mrb[0].mxu0 }
 0x132   : > { %v544_v41 = vadd.f32 %v543_v40, %v271_v4  ;;  %v620_v42 = vpop.f32.mrb[0].mxu1  ;;  %v545_v43 = vpop.f32.mrb[1].mxu0 }
 0x133   : > { %v621_v44 = vadd.f32 %v620_v42, %v271_v4  ;;  %v546_v45 = vadd.f32 %v545_v43, %v271_v4  ;;  %v622_v0 = vpop.f32.mrb[1].mxu1 }
 0x134   : > { %631 = vst [vmem:[%s188_s21] sm:$0xff] %v544_v41  ;;  %v623_v46 = vadd.f32 %v622_v0, %v271_v4 }
 0x135   : > { %633 = vst [vmem:[%s188_s21 + $0x10] sm:$0xff] %v621_v44  ;;  %632 = vst [vmem:[%s188_s21 + $0x8] sm:$0xff] %v546_v45  ;;  %v549_v48 = vpop.f32.mrb[2].mxu0 }
 0x136   : > { %634 = vst [vmem:[%s188_s21 + $0x18] sm:$0xff] %v623_v46  ;;  %v550_v49 = vadd.f32 %v549_v48, %v276_v47  ;;  %v626_v50 = vpop.f32.mrb[2].mxu1  ;;  %v551_v51 = vpop.f32.mrb[3].mxu0 }
 0x137   : > { %v627_v52 = vadd.f32 %v626_v50, %v276_v47  ;;  %v552_v53 = vadd.f32 %v551_v51, %v276_v47  ;;  %v628_v54 = vpop.f32.mrb[3].mxu1 }
 0x138   : > { %635 = vst [vmem:[%s188_s21 + $0x20] sm:$0xff] %v550_v49  ;;  %v629_v55 = vadd.f32 %v628_v54, %v276_v47 }
 0x139   : > { %637 = vst [vmem:[%s188_s21 + $0x30] sm:$0xff] %v627_v52  ;;  %636 = vst [vmem:[%s188_s21 + $0x28] sm:$0xff] %v552_v53 }
 0x13a   : > { %638 = vst [vmem:[%s188_s21 + $0x38] sm:$0xff] %v629_v55 }
 0x13b   : > { %1057 = shalt.err (!%p1054_p5)
}
 0x13c   : > { %s1058_s7 = scalar_lea.hbm %s1377_s29, 1024  ;;  %s1062_s10 = scalar_lea.hbm %s1432_s3, 2048 }
 0x13d   : > { %p1059_p6 = scmp.ne.s32.totalorder %s1377_s29, %s1058_s7  ;;  %p1063_p10 = scmp.lt.u32.totalorder %s1377_s29, %s1432_s3 }
 0x13e   : > { %p1064_p11 = scmp.lt.u32.totalorder %s1062_s10, %s1058_s7  ;;  %p1066_p13 = scmp.lt.u32.totalorder %s1058_s7, %s1377_s29 }
 0x13f   : > { %p1060_p7 = pnand %p1059_p6, %p1188_p4 }
 0x140   : > { %p1065_p12 = por %p1064_p11, %p1063_p10 }
 0x141   : > { %p1061_p9 = pneg %p1060_p7 }
 0x142   : > { %p1067_p0 = por %p1066_p13, %p1065_p12 }
 0x144   : > { %p1068_p1 = pnand %p1067_p0, %p1061_p9 }
 0x146   : > { %1071 = shalt.err (!%p1068_p1)
}
 0x147   : > { %s1126_s19 = smov 512   ;;  %s1127_s21 = smov 32  }
 0x148   : > { %985 = dma.vmem_to_hbm [thread:$0]  (%p1188_p4), %s1379_s26, 1024, %s1377_s29, %s1383_s15, %s1126_s19, %s1126_s19, %s1127_s21  }
 0x149 PF: > { %p991_p2 = scmp.ge.s32.totalorder %s1122_s17, 2  ;;  %s670_s23 = sand.u32 1, %s1102_s12  }
 0x14a   : > { %s671_s27 = scalar_lea.sflag [#allocation3], %s670_s23 }
 0x14b   : > { %p988_p3 = pnand %p991_p2, %p1195_p8 }
 0x14d   : > { %1097 = dma.done.wait (!%p988_p3), %s671_s27, 1024  }
 0x14e   : > { %1099 = vsyncadd (!%p988_p3), %s671_s27, 4294966272  ;;  %s16_s17 = sadd.s32 1, %s1122_s17   ;;  %s1437_s12 = smov %s1106_s13 }
 0x14f   : > { %p13_p5 = scmp.ge.s32.totalorder %s16_s17, 4   ;;  %s1438_s13 = smov %s1110_s14 }
 0x150   : > { %s1439_s14 = smov %s1201_s25  ;;  %s1440_s15 = smov %s1118_s16 }
 0x151   : > { %s1441_s16 = smov %s1443_s20  ;;  %15 = sbr.rel (!%p13_p5) target bundleno = 4 (0x4), region = 67 }
 0x158   :  { %676 = vsyncpa [#allocation3], 1 }
 0x159   :  { %678 = vsyncpa [#allocation3 + $0x1], 1 }

</bundles_post_ra>
